<compile_context>
chip_gen: v7x
topology: tpu7x:2x2x1
jax: 0.10.0
libtpu: 0.0.40
codegen_flags: <defaults>
</compile_context>

<pallas_src>
import numpy as np
import jax
import jax.numpy as jnp
from jax.experimental import pallas as pl
from jax.experimental.pallas import tpu as pltpu

EPS = 1e-12  # VERY_SMALL_NUMBER-style clamp for degree normalization


def anchor_gcn_kernel(x_ref, adj_ref, wt_ref, out_ref):
    x = x_ref[...]        # [Gb, N, F_in]   bf16
    adj = adj_ref[...]    # [Gb, N, A]      bf16
    wt = wt_ref[...]      # [F_in, F_out]   bf16 (weight pre-transposed in wrapper)

    gb, n, f_in = x.shape
    f_out = wt.shape[1]

    # support = x @ W^T, merged across the Gb graphs in this block:
    # one [Gb*N, F_in] x [F_in, F_out] MXU push with f32 accumulation.
    support = jnp.dot(x.reshape(gb * n, f_in), wt,
                      preferred_element_type=jnp.float32)              # [Gb*N, F_out]
    support = support.astype(jnp.bfloat16).reshape(gb, n, f_out)

    # Degree normalizers: f32 accumulation directly from bf16 adj (no live f32 copy).
    anchor_deg = jnp.sum(adj, axis=1, dtype=jnp.float32)                # [Gb, A]
    node_deg = jnp.sum(adj, axis=2, keepdims=True, dtype=jnp.float32)   # [Gb, N, 1]
    inv_anchor = pl.reciprocal(jnp.maximum(anchor_deg, EPS),
                               approx=True)[..., None]                  # [Gb, A, 1]
    inv_node = pl.reciprocal(jnp.maximum(node_deg, EPS), approx=True)   # [Gb, N, 1]

    # tmp = adj^T @ support per graph (contraction over N, no transpose materialized);
    # anchor normalization folded into the much smaller [A, F_out] tile.
    tmp = jnp.einsum('gna,gnf->gaf', adj, support,
                     preferred_element_type=jnp.float32)                # [Gb, A, F_out]
    tmp = (tmp * inv_anchor).astype(jnp.bfloat16)

    # out = adj @ tmp per graph, then node-side row scaling ([N,1] sublane broadcast).
    out = jnp.einsum('gna,gaf->gnf', adj, tmp,
                     preferred_element_type=jnp.float32)                # [Gb, N, F_out]
    out_ref[...] = (out * inv_node).astype(out_ref.dtype)


def anchor_gcn_forward(x, adj, weight, *, graphs_per_block=None,
                       out_dtype=jnp.bfloat16):
    """x: [G, N, F_in], adj: [G, N, A], weight: [F_out, F_in] -> [G, N, F_out]."""
    G, N, f_in = x.shape
    A = adj.shape[-1]
    f_out = weight.shape[0]

    if graphs_per_block is None:
        # Largest divisor of G keeping the merged matmul M-dim (Gb*N) <= 512 rows
        # (DMA sweet spot). On v7x with 2 TensorCores, pass graphs_per_block=G//2
        # explicitly to give each core one large block.
        graphs_per_block = 1
        for d in range(1, G + 1):
            if G % d == 0 and d * N <= 512:
                graphs_per_block = d
    gb = graphs_per_block
    assert G % gb == 0, "graphs_per_block must divide G"

    # One-time parameter transpose + bf16 casts in plain JAX (outside the kernel).
    wt = jnp.transpose(weight).astype(jnp.bfloat16)   # [F_in, F_out]
    x_b = x.astype(jnp.bfloat16)
    adj_b = adj.astype(jnp.bfloat16)

    return pl.pallas_call(
        anchor_gcn_kernel,
        out_shape=jax.ShapeDtypeStruct((G, N, f_out), out_dtype),
        grid=(G // gb,),
        in_specs=[
            pl.BlockSpec((gb, N, f_in), lambda g: (g, 0, 0)),
            pl.BlockSpec((gb, N, A), lambda g: (g, 0, 0)),
            pl.BlockSpec((f_in, f_out), lambda g: (0, 0)),   # weight reused every step
        ],
        out_specs=pl.BlockSpec((gb, N, f_out), lambda g: (g, 0, 0)),
        compiler_params=pltpu.CompilerParams(
            dimension_semantics=("parallel",)),   # independent graph blocks
    )(x_b, adj_b, wt)


if __name__ == "__main__":
    key = jax.random.PRNGKey(0)
    G, N, A = 4, 64, 16
    in_features, out_features = 32, 128   # F_out = 128 -> lane-dense output stores

    k1, k2, k3 = jax.random.split(key, 3)
    x = jax.random.normal(k1, (G, N, in_features), dtype=jnp.float32)
    # non-negative node-anchor adjacency (as produced by graph learners in practice)
    adj = jax.nn.relu(jax.random.normal(k2, (G, N, A), dtype=jnp.float32))
    # deterministic glorot-uniform init for the Linear weight [out, in]
    limit = float(np.sqrt(6.0 / (in_features + out_features)))
    weight = jax.random.uniform(
        k3, (out_features, in_features), minval=-limit, maxval=limit,
        dtype=jnp.float32)

    out = anchor_gcn_forward(x, adj, weight)
    out = jax.block_until_ready(out)
    out_f32 = np.asarray(out.astype(jnp.float32))

    # Pure-numpy float64 reference on the same bf16-rounded operands.
    xb = np.asarray(x.astype(jnp.bfloat16).astype(jnp.float32), dtype=np.float64)
    ab = np.asarray(adj.astype(jnp.bfloat16).astype(jnp.float32), dtype=np.float64)
    wb = np.asarray(weight.astype(jnp.bfloat16).astype(jnp.float32), dtype=np.float64)

    support_ref = xb @ wb.T                                    # [G, N, F_out]
    a_deg = np.maximum(ab.sum(axis=1), EPS)[:, None, :]        # [G, 1, A]
    n_deg = np.maximum(ab.sum(axis=2), EPS)[:, :, None]        # [G, N, 1]
    anchor_diff_ref = ab / a_deg                               # adj @ diag(1/anchor_deg)
    node_diff_ref = ab / n_deg                                 # diag(1/node_deg) @ adj
    ref = node_diff_ref @ (np.swapaxes(anchor_diff_ref, 1, 2) @ support_ref)

    # bf16 MXU feeds + approx reciprocal + bf16 output storage -> a few % tolerance
    np.testing.assert_allclose(out_f32, ref, rtol=3e-2, atol=3e-2)
    print("KERNEL_OK")
</pallas_src>

<mosaic_0001>
module attributes {stable_mosaic.version = 11 : i64} {
  func.func @anchor_gcn_kernel(%arg0: i32, %arg1: memref<4x64x32xbf16, #tpu.memory_space<vmem>>, %arg2: memref<4x64x16xbf16, #tpu.memory_space<vmem>>, %arg3: memref<32x128xbf16, #tpu.memory_space<vmem>>, %arg4: memref<4x64x128xbf16, #tpu.memory_space<vmem>>) attributes {dimension_semantics = [#tpu.dimension_semantics<parallel>], iteration_bounds = array<i64: 1>, scalar_prefetch = 0 : i64, scratch_operands = 0 : i64, tpu.core_type = #tpu.core_type<tc>, window_params = [{transform_indices = @transform_0, window_bounds = array<i64: 4, 64, 32>}, {transform_indices = @transform_1, window_bounds = array<i64: 4, 64, 16>}, {pipeline_mode = #tpu.pipeline_mode<synchronous>, transform_indices = @transform_2, window_bounds = array<i64: 32, 128>}, {transform_indices = @transform_3, window_bounds = array<i64: 4, 64, 128>}]} {
    %c0 = arith.constant 0 : index
    %c0_0 = arith.constant 0 : index
    %c0_1 = arith.constant 0 : index
    %0 = vector.load %arg1[%c0, %c0_0, %c0_1] : memref<4x64x32xbf16, #tpu.memory_space<vmem>>, vector<4x64x32xbf16>
    %c0_2 = arith.constant 0 : index
    %c0_3 = arith.constant 0 : index
    %c0_4 = arith.constant 0 : index
    %1 = vector.load %arg2[%c0_2, %c0_3, %c0_4] : memref<4x64x16xbf16, #tpu.memory_space<vmem>>, vector<4x64x16xbf16>
    %c0_5 = arith.constant 0 : index
    %c0_6 = arith.constant 0 : index
    %2 = vector.load %arg3[%c0_5, %c0_6] : memref<32x128xbf16, #tpu.memory_space<vmem>>, vector<32x128xbf16>
    %3 = vector.shape_cast %0 : vector<4x64x32xbf16> to vector<256x32xbf16>
    %cst = arith.constant dense<0.000000e+00> : vector<256x128xf32>
    %4 = tpu.matmul %3, %2, %cst {dimension_numbers = #tpu.dot_dimension_numbers<[1], [0], [0], [1], [0, 0, 1, 1], [], []>} : vector<256x32xbf16>, vector<32x128xbf16>, vector<256x128xf32> -> vector<256x128xf32>
    %5 = arith.truncf %4 : vector<256x128xf32> to vector<256x128xbf16>
    %6 = vector.shape_cast %5 : vector<256x128xbf16> to vector<4x64x128xbf16>
    %7 = arith.extf %1 : vector<4x64x16xbf16> to vector<4x64x16xf32>
    %cst_7 = arith.constant dense<0.000000e+00> : vector<4x16xf32>
    %8 = vector.multi_reduction <add>, %7, %cst_7 [1] : vector<4x64x16xf32> to vector<4x16xf32>
    %9 = arith.extf %1 : vector<4x64x16xbf16> to vector<4x64x16xf32>
    %cst_8 = arith.constant dense<0.000000e+00> : vector<4x64xf32>
    %10 = vector.multi_reduction <add>, %9, %cst_8 [2] : vector<4x64x16xf32> to vector<4x64xf32>
    %11 = vector.shape_cast %10 : vector<4x64xf32> to vector<4x64x1xf32>
    %cst_9 = arith.constant 9.99999996E-13 : f32
    %12 = vector.broadcast %cst_9 : f32 to vector<4x16xf32>
    %13 = arith.maximumf %8, %12 : vector<4x16xf32>
    %14 = tpu.reciprocal %13 {approx = true} : vector<4x16xf32> -> vector<4x16xf32>
    %15 = vector.shape_cast %14 : vector<4x16xf32> to vector<4x16x1xf32>
    %cst_10 = arith.constant 9.99999996E-13 : f32
    %16 = vector.broadcast %cst_10 : f32 to vector<4x64x1xf32>
    %17 = arith.maximumf %11, %16 : vector<4x64x1xf32>
    %18 = tpu.reciprocal %17 {approx = true} : vector<4x64x1xf32> -> vector<4x64x1xf32>
    "tpu.trace_start"() <{level = 10 : i32, message = "gna,gnf->gaf"}> : () -> ()
    %cst_11 = arith.constant dense<0.000000e+00> : vector<4x16x128xf32>
    %19 = tpu.matmul %1, %6, %cst_11 {dimension_numbers = #tpu.dot_dimension_numbers<[1], [1], [2], [2], [0, 0, 0, 2, 1, 2], [0], [0]>} : vector<4x64x16xbf16>, vector<4x64x128xbf16>, vector<4x16x128xf32> -> vector<4x16x128xf32>
    "tpu.trace_stop"() : () -> ()
    %20 = vector.broadcast %15 : vector<4x16x1xf32> to vector<4x16x128xf32>
    %21 = arith.mulf %19, %20 : vector<4x16x128xf32>
    %22 = arith.truncf %21 : vector<4x16x128xf32> to vector<4x16x128xbf16>
    "tpu.trace_start"() <{level = 10 : i32, message = "gna,gaf->gnf"}> : () -> ()
    %cst_12 = arith.constant dense<0.000000e+00> : vector<4x64x128xf32>
    %23 = tpu.matmul %1, %22, %cst_12 {dimension_numbers = #tpu.dot_dimension_numbers<[2], [1], [1], [2], [0, 0, 0, 1, 1, 2], [0], [0]>} : vector<4x64x16xbf16>, vector<4x16x128xbf16>, vector<4x64x128xf32> -> vector<4x64x128xf32>
    "tpu.trace_stop"() : () -> ()
    %24 = vector.broadcast %18 : vector<4x64x1xf32> to vector<4x64x128xf32>
    %25 = arith.mulf %23, %24 : vector<4x64x128xf32>
    %26 = arith.truncf %25 : vector<4x64x128xf32> to vector<4x64x128xbf16>
    %c0_13 = arith.constant 0 : index
    %c0_14 = arith.constant 0 : index
    %c0_15 = arith.constant 0 : index
    %27 = vector.load %arg4[%c0_13, %c0_14, %c0_15] : memref<4x64x128xbf16, #tpu.memory_space<vmem>>, vector<4x64x128xbf16>
    tpu.vector_store %arg4[%c0_13, %c0_14, %c0_15], %26 {strides = array<i32>} : memref<4x64x128xbf16, #tpu.memory_space<vmem>>, vector<4x64x128xbf16>,
    return
  }
  func.func @transform_0(%arg0: i32) -> (i32, i32, i32) {
    %c0_i32 = arith.constant 0 : i32
    %c0_i32_0 = arith.constant 0 : i32
    %c0_i32_1 = arith.constant 0 : i32
    return %arg0, %c0_i32, %c0_i32_0 : i32, i32, i32
  }
  func.func @transform_1(%arg0: i32) -> (i32, i32, i32) {
    %c0_i32 = arith.constant 0 : i32
    %c0_i32_0 = arith.constant 0 : i32
    %c0_i32_1 = arith.constant 0 : i32
    return %arg0, %c0_i32, %c0_i32_0 : i32, i32, i32
  }
  func.func @transform_2(%arg0: i32) -> (i32, i32) {
    %c0_i32 = arith.constant 0 : i32
    %c0_i32_0 = arith.constant 0 : i32
    %c0_i32_1 = arith.constant 0 : i32
    return %c0_i32, %c0_i32_0 : i32, i32
  }
  func.func @transform_3(%arg0: i32) -> (i32, i32, i32) {
    %c0_i32 = arith.constant 0 : i32
    %c0_i32_0 = arith.constant 0 : i32
    %c0_i32_1 = arith.constant 0 : i32
    return %arg0, %c0_i32, %c0_i32_0 : i32, i32, i32
  }
}

</mosaic_0001>

<bundles_post_ra>
// kernel: tpu_custom_call.1
= control target key start
LH: loop header
LB: loop body
LE: loop exit
PB: predicated region body
PF: predicated region fallthrough
CT: control target
= control target key end

     0   :  { %vm176_vm0 = vcmask 261120   ;;  %s2590_s0 = inlined_call_operand.vmem [shape: bf16[4,64,32], index: 0, kind: input, shape index: {}]   ;;  %s2591_s1 = inlined_call_operand.vmem [shape: bf16[4,64,16], index: 1, kind: input, shape index: {}]   ;;  %s2592_s2 = inlined_call_operand.vmem [shape: bf16[32,128], index: 2, kind: input, shape index: {}]   ;;  %s2593_s3 = inlined_call_operand.hbm [shape: bf16[4,64,128], index: 3, kind: output, shape index: {}]  }
   0x1   :  { %v1965_v0 = vld [vmem:[%s2592_s2] sm:$0xff]   ;;  %v1966_v1 = vld [vmem:[%s2592_s2 + $0x8] sm:$0xff]   ;;  %v1969_v4 = vld [vmem:[%s2590_s0 + $0x10] sm:$0xff]  }
   0x2   :  { %1835 = vmatprep.subr.bf16.mxu0 %v1965_v0  ;;  %v1967_v2 = vld [vmem:[%s2590_s0] sm:$0xff]   ;;  %v1968_v3 = vld [vmem:[%s2590_s0 + $0x8] sm:$0xff]   ;;  %v1970_v5 = vld [vmem:[%s2590_s0 + $0x18] sm:$0xff]  }
   0x3   :  { %1836 = vmatpush3.bf16.msra.mxu0 %v1965_v0  ;;  %1839 = vmatprep.mubr.msk.bf16.mxu0 %vm176_vm0, %v1967_v2  ;;  %v1971_v6 = vld [vmem:[%s2590_s0 + $0x20] sm:$0xff]   ;;  %v2169_v8 = vld [vmem:[%s2591_s1 + $0x8] sm:$0xff]   ;;  %v2184_v11 = vld [vmem:[%s2591_s1 + $0x10] sm:$0xff]  }
   0x4   :  { %1837 = vmatprep.subr.bf16.mxu0 %v1966_v1  ;;  %v2164_v7 = vld [vmem:[%s2591_s1] sm:$0xff]   ;;  %v1972_v10 = vld [vmem:[%s2590_s0 + $0x28] sm:$0xff]   ;;  %v1973_v12 = vld [vmem:[%s2590_s0 + $0x30] sm:$0xff]  }
   0x5   :  { %707 = vxpose.xlu0.c.b16.start [1/4] (short) (narrow) %v2164_v7, 16  ;;  %v2176_v9 = vld [vmem:[%s2591_s1 + $0x20] sm:$0xff]   ;;  %v2192_v13 = vld [vmem:[%s2591_s1 + $0x28] sm:$0xff]  }
   0x6   :  { %2606 = vst [vmem:[#allocation5_spill] sm:$0xff] %v2192_v13 }
   0x7   :  { %1838 = vmatpush3.bf16.msra.mxu0 %v1966_v1 }
   0xa   :  { %1840 = vmatmul.mubr.msk.bf16.vlgmr.msra.gmra.mrb[0].mxu0 %vm176_vm0, %v1968_v3 }
   0xb   :  { %1843 = vmatprep.mubr.msk.bf16.mxu0 %vm176_vm0, %v1969_v4 }
  0x12   :  { %1844 = vmatmul.mubr.msk.bf16.gmra.mrb[4].mxu0 %vm176_vm0, %v1970_v5 }
  0x13   :  { %1847 = vmatprep.mubr.msk.bf16.mxu0 %vm176_vm0, %v1971_v6 }
  0x14   :  { %8 = vsyncpa [#allocation3], 0  ;;  %708 = vxpose.xlu0.c.b16.cont [2/4] (short) (narrow) %v2169_v8, 16  ;;  %v2199_v14 = vld [vmem:[%s2591_s1 + $0x18] sm:$0xff]   ;;  %792 = vxpose.xlu1.c.b16.start [1/4] (short) (narrow) %v2176_v9, 16  ;;  %v2206_v15 = vld [vmem:[%s2591_s1 + $0x30] sm:$0xff]   ;;  %v403_v35 = vunpack.c.h.bf16 %v2164_v7  ;;  %v402_v36 = vunpack.c.l.bf16 %v2164_v7  ;;  %v411_v37 = vunpack.c.h.bf16 %v2176_v9  ;;  %v410_v38 = vunpack.c.l.bf16 %v2176_v9 }
  0x15   :  { %2607 = vst [vmem:[#allocation6_spill] sm:$0xff] %v2206_v15  ;;  %v1974_v16 = vld [vmem:[%s2590_s0 + $0x38] sm:$0xff]   ;;  %v2216_v17 = vld [vmem:[%s2591_s1 + $0x40] sm:$0xff]   ;;  %v2232_v20 = vld [vmem:[%s2591_s1 + $0x48] sm:$0xff]   ;;  %vm434_vm1 = vcmask 130048   ;;  %v2594_v34 = vmov 0.0   ;;  %v404_v41 = vunpack.c.l.bf16 %v2169_v8  ;;  %v412_v44 = vunpack.c.l.bf16 %v2192_v13 }
  0x16   :  { %v1975_v18 = vld [vmem:[%s2590_s0 + $0x40] sm:$0xff]   ;;  %v2224_v19 = vld [vmem:[%s2591_s1 + $0x38] sm:$0xff]   ;;  %2609 = vst [vmem:[#allocation8_spill] sm:$0xff] %v2232_v20  ;;  %v1976_v22 = vld [vmem:[%s2590_s0 + $0x48] sm:$0xff]   ;;  %1871 = vmatprep.subr.bf16.mxu1 %v2594_v34  ;;  %v2310_v39 = vsel %vm434_vm1, %v403_v35, 0.0  ;;  %v2313_v40 = vsel %vm434_vm1, %v402_v36, 0.0  ;;  %v418_v45 = vunpack.c.l.bf16 %v2216_v17  ;;  %v419_v46 = vunpack.c.h.bf16 %v2216_v17 }
  0x17   :  { %2608 = vst [vmem:[#allocation7_spill] sm:$0xff] %v2224_v19  ;;  %v2238_v21 = vld [vmem:[%s2591_s1 + $0x60] sm:$0xff]   ;;  %v2248_v23 = vld [vmem:[%s2591_s1 + $0x50] sm:$0xff]   ;;  %v2256_v25 = vld [vmem:[%s2591_s1 + $0x68] sm:$0xff]   ;;  %v2317_v42 = vsel %vm434_vm1, %v411_v37, 0.0  ;;  %v2320_v43 = vsel %vm434_vm1, %v410_v38, 0.0  ;;  %v437_v49 = vadd.f32 %v2310_v39, %v2313_v40  ;;  %v405_v50 = vunpack.c.h.bf16 %v2169_v8 }
  0x18   :  { %709 = vxpose.xlu0.c.b16.cont [3/4] (short) (narrow) %v2184_v11, 16  ;;  %793 = vxpose.xlu1.c.b16.cont [2/4] (short) (narrow) %v2192_v13, 16  ;;  %2610 = vst [vmem:[#allocation9_spill] sm:$0xff] %v2238_v21  ;;  %2611 = vst [vmem:[#allocation10_spill] sm:$0xff] %v2248_v23  ;;  %v1977_v24 = vld [vmem:[%s2590_s0 + $0x50] sm:$0xff]   ;;  %v2263_v26 = vld [vmem:[%s2591_s1 + $0x58] sm:$0xff]   ;;  %v426_v47 = vunpack.c.l.bf16 %v2238_v21  ;;  %v427_v48 = vunpack.c.h.bf16 %v2238_v21  ;;  %v413_v52 = vunpack.c.h.bf16 %v2192_v13  ;;  %v458_v53 = vadd.f32 %v2317_v42, %v2320_v43 }
  0x19   :  { %2612 = vst [vmem:[#allocation11_spill] sm:$0xff] %v2256_v25  ;;  %2613 = vst [vmem:[#allocation12_spill] sm:$0xff] %v2263_v26  ;;  %v2270_v27 = vld [vmem:[%s2591_s1 + $0x70] sm:$0xff]   ;;  %v1978_v28 = vld [vmem:[%s2590_s0 + $0x58] sm:$0xff]   ;;  %vm2112_vm2 = vmmov 0   ;;  %v2333_v51 = vsel %vm434_vm1, %v404_v41, 0.0  ;;  %v420_v56 = vunpack.c.l.bf16 %v2232_v20  ;;  %v428_v60 = vunpack.c.l.bf16 %v2256_v25 }
  0x1a   :  { %1848 = vmatmul.mubr.msk.bf16.gmra.mrb[8].mxu0 %vm176_vm0, %v1972_v10  ;;  %2614 = vst [vmem:[#allocation13_spill] sm:$0xff] %v2270_v27  ;;  %v1979_v29 = vld [vmem:[%s2590_s0 + $0x60] sm:$0xff]   ;;  %v2283_v30 = vld [vmem:[%s2591_s1 + $0x78] sm:$0xff]   ;;  %v1980_v31 = vld [vmem:[%s2590_s0 + $0x68] sm:$0xff]   ;;  %1879 = vmatprep.mubr.msk.bf16.mxu1 %vm2112_vm2, %v2594_v34  ;;  %v2339_v54 = vsel %vm434_vm1, %v412_v44, 0.0  ;;  %v2342_v55 = vsel %vm434_vm1, %v418_v45, 0.0  ;;  %v439_v62 = vadd.f32 %v2333_v51, %v437_v49  ;;  %v406_v63 = vunpack.c.l.bf16 %v2184_v11 }
  0x1b   :  { %1851 = vmatprep.mubr.msk.bf16.mxu0 %vm176_vm0, %v1973_v12  ;;  %2615 = vst [vmem:[#allocation14_spill] sm:$0xff] %v2283_v30  ;;  %v1981_v32 = vld [vmem:[%s2590_s0 + $0x70] sm:$0xff]   ;;  %v1982_v33 = vld [vmem:[%s2590_s0 + $0x78] sm:$0xff]   ;;  %v2346_v57 = vsel %vm434_vm1, %v419_v46, 0.0  ;;  %v2349_v58 = vsel %vm434_vm1, %v426_v47, 0.0  ;;  %v2352_v59 = vsel %vm434_vm1, %v427_v48, 0.0  ;;  %v460_v1 = vadd.f32 %v2339_v54, %v458_v53 }
  0x1c   :  { %710 = vxpose.xlu0.c.b16.end [4/4] (short) (narrow) %v2199_v14, 16  ;;  %794 = vxpose.xlu1.c.b16.cont [3/4] (short) (narrow) %v2206_v15, 16  ;;  %v2356_v61 = vsel %vm434_vm1, %v405_v50, 0.0  ;;  %v2361_v0 = vsel %vm434_vm1, %v413_v52, 0.0  ;;  %v414_v2 = vunpack.c.l.bf16 %v2206_v15  ;;  %v479_v3 = vadd.f32 %v2346_v57, %v2342_v55  ;;  %s2113_s0 = smov [#allocation2]  }
  0x1d   :  { %v500_v4 = vadd.f32 %v2352_v59, %v2349_v58  ;;  %v421_v5 = vunpack.c.h.bf16 %v2232_v20  ;;  %v2371_v6 = vsel %vm434_vm1, %v420_v56, 0.0  ;;  %v2375_v10 = vsel %vm434_vm1, %v428_v60, 0.0  ;;  %s1537_s22 = sshll.u32 %s2113_s0, 4  ;;  %s1538_s22 = int_to_ptr.vmem [resolvable:$true] %s1537_s22 }
  0x1e   :  { %v441_v12 = vadd.f32 %v2356_v61, %v439_v62  ;;  %v430_v36 = vunpack.c.l.bf16 %v2270_v27  ;;  %v408_v41 = vunpack.c.l.bf16 %v2199_v14  ;;  %v416_v44 = vunpack.c.l.bf16 %v2224_v19  ;;  %s2087_s23 = scalar_lea.vmem %s1538_s22, 2048  ;;  %p2092_p1 = scmp.lt.s32.totalorder %s1538_s22, %s1538_s22 }
  0x1f   :  { %v423_v49 = vunpack.c.h.bf16 %v2248_v23  ;;  %v431_v52 = vunpack.c.h.bf16 %v2270_v27  ;;  %v409_v60 = vunpack.c.h.bf16 %v2199_v14  ;;  %vm723_vm3 = vcmask 523264   ;;  %p2088_p0 = scmp.ne.s32.totalorder %s1538_s22, %s2087_s23  ;;  %p2093_p2 = scmp.lt.s32.totalorder %s2087_s23, %s2087_s23 }
  0x20   :  { %876 = vxpose.xlu0.c.b16.start [1/4] (short) (narrow) %v2216_v17, 16  ;;  %795 = vxpose.xlu1.c.b16.end [4/4] (short) (narrow) %v2224_v19, 16  ;;  %v2415_v53 = vsel %vm434_vm1, %v430_v36, 0.0  ;;  %v2420_v62 = vsel %vm434_vm1, %v408_v41, 0.0 }
  0x21   :  { %p2094_p3 = por %p2093_p2, %p2092_p1 }
  0x22   :  { %1852 = vmatmul.mubr.msk.bf16.gmra.mrb[12].mxu0 %vm176_vm0, %v1974_v16  ;;  %v407_v16 = vunpack.c.h.bf16 %v2184_v11 }
  0x23   :  { %1855 = vmatprep.mubr.msk.bf16.mxu0 %vm176_vm0, %v1975_v18  ;;  %v2380_v18 = vsel %vm434_vm1, %v406_v63, 0.0  ;;  %v417_v63 = vunpack.c.h.bf16 %v2224_v19  ;;  %p2095_p4 = pnand %p2094_p3, %p2088_p0 }
  0x24   :  { %877 = vxpose.xlu0.c.b16.cont [2/4] (short) (narrow) %v2232_v20, 16  ;;  %960 = vxpose.xlu1.c.b16.start [1/4] (short) (narrow) %v2238_v21, 16  ;;  %v2398_v37 = vsel %vm434_vm1, %v407_v16, 0.0  ;;  %v443_v38 = vadd.f32 %v2380_v18, %v441_v12  ;;  %v2434_v12 = vsel %vm434_vm1, %v431_v52, 0.0  ;;  %v432_v16 = vunpack.c.l.bf16 %v2283_v30 }
  0x26   :  { %v445_v56 = vadd.f32 %v2398_v37, %v443_v38  ;;  %v425_v38 = vunpack.c.h.bf16 %v2263_v26 }
  0x28   :  { %878 = vxpose.xlu0.c.b16.cont [3/4] (short) (narrow) %v2248_v23, 16  ;;  %961 = vxpose.xlu1.c.b16.cont [2/4] (short) (narrow) %v2256_v25, 16 }
  0x2a   :  { %1856 = vmatmul.mubr.msk.bf16.gmra.mrb[16].mxu0 %vm176_vm0, %v1976_v22  ;;  %v415_v22 = vunpack.c.h.bf16 %v2206_v15 }
  0x2b   :  { %1859 = vmatprep.mubr.msk.bf16.mxu0 %vm176_vm0, %v1977_v24  ;;  %v462_v24 = vadd.f32 %v2361_v0, %v460_v1 }
  0x2c   :  { %879 = vxpose.xlu0.c.b16.end [4/4] (short) (narrow) %v2263_v26, 16  ;;  %962 = vxpose.xlu1.c.b16.cont [3/4] (short) (narrow) %v2270_v27, 16  ;;  %v2404_v45 = vsel %vm434_vm1, %v415_v22, 0.0  ;;  %v2438_v22 = vsel %vm434_vm1, %v409_v60, 0.0 }
  0x30   :  { %963 = vxpose.xlu1.c.b16.end [4/4] (short) (narrow) %v2283_v30, 16 }
  0x32   :  { %1860 = vmatmul.mubr.msk.bf16.gmra.mrb[20].mxu0 %vm176_vm0, %v1978_v28  ;;  %v2385_v28 = vsel %vm434_vm1, %v414_v2, 0.0  ;;  %v2425_v2 = vsel %vm434_vm1, %v416_v44, 0.0  ;;  %v433_v44 = vunpack.c.h.bf16 %v2283_v30 }
  0x33   :  { %1863 = vmatprep.mubr.msk.bf16.mxu0 %vm176_vm0, %v1979_v29  ;;  %v481_v29 = vadd.f32 %v2371_v6, %v479_v3  ;;  %v464_v46 = vadd.f32 %v2385_v28, %v462_v24  ;;  %v2441_v24 = vsel %vm434_vm1, %v417_v63, 0.0 }
  0x34   :  { %v2463_v60 = vsel %vm434_vm1, %v433_v44, 0.0 }
  0x35   :  { %v466_v1 = vadd.f32 %v2404_v45, %v464_v46  ;;  %v2453_v46 = vsel %vm434_vm1, %v432_v16, 0.0 }
  0x3a   :  { %1864 = vmatmul.mubr.msk.bf16.gmra.mrb[24].mxu0 %vm176_vm0, %v1980_v31  ;;  %v502_v31 = vadd.f32 %v2375_v10, %v500_v4 }
  0x3b   :  { %1867 = vmatprep.mubr.msk.bf16.mxu0 %vm176_vm0, %v1981_v32  ;;  %v2390_v32 = vsel %vm434_vm1, %v421_v5, 0.0  ;;  %v2430_v5 = vsel %vm434_vm1, %v423_v49, 0.0 }
  0x3c   :  { %v483_v47 = vadd.f32 %v2390_v32, %v481_v29  ;;  %v447_v29 = vadd.f32 %v2420_v62, %v445_v56  ;;  %v2460_v56 = vsel %vm434_vm1, %v425_v38, 0.0 }
  0x42   :  { %1868 = vmatmul.mubr.msk.bf16.gmra.mrb[28].mxu0 %vm176_vm0, %v1982_v33  ;;  %v422_v33 = vunpack.c.l.bf16 %v2248_v23 }
  0x43   :  { %1921 = vmatprep.mubr.msk.bf16.mxu0 %vm434_vm1, %v2164_v7  ;;  %v429_v7 = vunpack.c.h.bf16 %v2256_v25 }
  0x44   :  { %v2411_v50 = vsel %vm434_vm1, %v422_v33, 0.0 }
  0x45   :  { %v2394_v35 = vsel %vm434_vm1, %v429_v7, 0.0  ;;  %v485_v3 = vadd.f32 %v2411_v50, %v483_v47  ;;  %v424_v7 = vunpack.c.l.bf16 %v2263_v26  ;;  %v449_v47 = vadd.f32 %v2438_v22, %v447_v29 }
  0x46   :  { %v504_v48 = vadd.f32 %v2394_v35, %v502_v31  ;;  %v468_v31 = vadd.f32 %v2425_v2, %v466_v1 }
  0x47   :  { %v487_v33 = vadd.f32 %v2430_v5, %v485_v3  ;;  %v2449_v41 = vsel %vm434_vm1, %v424_v7, 0.0  ;;  %v450_v63 = vrot.slane %v449_v47, 4 }
  0x48   :  { %v506_v4 = vadd.f32 %v2415_v53, %v504_v48  ;;  %v470_v48 = vadd.f32 %v2441_v24, %v468_v31 }
  0x49   :  { %v489_v49 = vadd.f32 %v2449_v41, %v487_v33  ;;  %v451_v7 = vadd.f32 %v450_v63, %v449_v47 }
  0x4a   :  { %v508_v36 = vadd.f32 %v2434_v12, %v506_v4  ;;  %v471_v1 = vrot.slane %v470_v48, 4 }
  0x4b   :  { %v491_v3 = vadd.f32 %v2460_v56, %v489_v49  ;;  %v452_v34 = vrot.slane %v451_v7, 2 }
  0x4c   :  { %v510_v52 = vadd.f32 %v2453_v46, %v508_v36  ;;  %v472_v16 = vadd.f32 %v471_v1, %v470_v48 }
  0x4d   :  { %v492_v29 = vrot.slane %v491_v3, 4  ;;  %v453_v27 = vadd.f32 %v452_v34, %v451_v7 }
  0x4e   :  { %v512_v4 = vadd.f32 %v2463_v60, %v510_v52  ;;  %v473_v33 = vrot.slane %v472_v16, 2 }
  0x4f   :  { %v493_v30 = vadd.f32 %v492_v29, %v491_v3  ;;  %v454_v44 = vrot.slane %v453_v27, 1 }
  0x50   :  { %v513_v31 = vrot.slane %v512_v4, 4  ;;  %v474_v38 = vadd.f32 %v473_v33, %v472_v16 }
  0x51   :  { %v494_v25 = vrot.slane %v493_v30, 2  ;;  %v455_v19 = vadd.f32 %v454_v44, %v453_v27  ;;  %v2616_v27 = vmov 0.0  }
  0x52   :  { %v514_v36 = vadd.f32 %v513_v31, %v512_v4  ;;  %v475_v23 = vrot.slane %v474_v38, 1 }
  0x53   :  { %v495_v20 = vadd.f32 %v494_v25, %v493_v30  ;;  %v583_v47 = vmax.f32 %v455_v19, 1e-12 }
  0x54   :  { %v515_v26 = vrot.slane %v514_v36, 2  ;;  %v476_v49 = vadd.f32 %v475_v23, %v474_v38 }
  0x55   :  { %v496_v15 = vrot.slane %v495_v20, 1  ;;  %2015 = vrcp.f32 %v583_v47 }
  0x56   :  { %v516_v21 = vadd.f32 %v515_v26, %v514_v36  ;;  %v584_v48 = vmax.f32 %v476_v49, 1e-12 }
  0x57   :  { %v497_v63 = vadd.f32 %v496_v15, %v495_v20 }
  0x58   :  { %v517_v52 = vrot.slane %v516_v21, 1  ;;  %2017 = vrcp.f32 %v584_v48 }
  0x59   :  { %v585_v13 = vmax.f32 %v497_v63, 1e-12 }
  0x5a   :  { %v518_v1 = vadd.f32 %v517_v52, %v516_v21 }
  0x5b   :  { %2019 = vrcp.f32 %v585_v13 }
  0x5c   :  { %v586_v34 = vmax.f32 %v518_v1, 1e-12 }
  0x5e   :  { %2021 = vrcp.f32 %v586_v34 }
  0x5f   :  { %v2016_v3 = vpop.eup %2015 }
  0x60   :  { %592 = vbcast.lane.b32.xlu0 %v2016_v3, 256  ;;  %596 = vbcast.lane.b32.xlu1 %v2016_v3, 264 }
  0x62   :  { %v2018_v4 = vpop.eup %2017 }
  0x64   :  { %599 = vbcast.lane.b32.xlu1 %v2018_v4, 256 }
  0x65   :  { %v2020_v25 = vpop.eup %2019 }
  0x66   :  { %606 = vbcast.lane.b32.xlu0 %v2020_v25, 256 }
  0x68   :  { %v2022_v23 = vpop.eup %2021  ;;  %603 = vbcast.lane.b32.xlu1 %v2018_v4, 264 }
  0x6a   :  { %613 = vbcast.lane.b32.xlu0 %v2022_v23, 256 }
  0x6c   :  { %610 = vbcast.lane.b32.xlu1 %v2020_v25, 264 }
  0x70   :  { %617 = vbcast.lane.b32.xlu1 %v2022_v23, 264 }
  0x7a   :  { %v800_v49 = vpop.trf.xlu1 }
  0x89   :  { %519 = vadd.xlane.f32.xlu0 %v2313_v40 }
  0x8d   :  { %523 = vadd.xlane.f32.xlu0 %v2333_v51 }
  0x91   :  { %525 = vadd.xlane.f32.xlu0 %v2356_v61 }
  0x94   :  { %521 = vadd.xlane.f32.xlu1 %v2310_v39 }
  0x95   :  { %527 = vadd.xlane.f32.xlu0 %v2380_v18  ;;  %v715_v18 = vpop.trf.xlu0 }
  0x98   :  { %529 = vadd.xlane.f32.xlu1 %v2398_v37 }
  0x99   :  { %531 = vadd.xlane.f32.xlu0 %v2420_v62  ;;  %v884_v1 = vpop.trf.xlu0 }
  0x9c   :  { %533 = vadd.xlane.f32.xlu1 %v2438_v22 }
  0x9d   :  { %535 = vadd.xlane.f32.xlu0 %v2320_v43 }
  0xa0   :  { %537 = vadd.xlane.f32.xlu1 %v2317_v42 }
  0xa1   :  { %539 = vadd.xlane.f32.xlu0 %v2339_v54 }
  0xa4   :  { %541 = vadd.xlane.f32.xlu1 %v2361_v0 }
  0xa5   :  { %543 = vadd.xlane.f32.xlu0 %v2385_v28 }
  0xa8   :  { %545 = vadd.xlane.f32.xlu1 %v2404_v45 }
  0xa9   :  { %547 = vadd.xlane.f32.xlu0 %v2425_v2 }
  0xac   :  { %549 = vadd.xlane.f32.xlu1 %v2441_v24 }
  0xad   :  { %551 = vadd.xlane.f32.xlu0 %v2342_v55 }
  0xb0   :  { %553 = vadd.xlane.f32.xlu1 %v2346_v57 }
  0xb1   :  { %555 = vadd.xlane.f32.xlu0 %v2371_v6 }
  0xb4   :  { %557 = vadd.xlane.f32.xlu1 %v2390_v32 }
  0xb5   :  { %559 = vadd.xlane.f32.xlu0 %v2411_v50 }
  0xb8   :  { %561 = vadd.xlane.f32.xlu1 %v2430_v5 }
  0xb9   :  { %563 = vadd.xlane.f32.xlu0 %v2449_v41 }
  0xbc   :  { %565 = vadd.xlane.f32.xlu1 %v2460_v56 }
  0xbd   :  { %567 = vadd.xlane.f32.xlu0 %v2349_v58 }
  0xc0   :  { %569 = vadd.xlane.f32.xlu1 %v2352_v59 }
  0xc1   :  { %571 = vadd.xlane.f32.xlu0 %v2375_v10 }
  0xc4   :  { %573 = vadd.xlane.f32.xlu1 %v2394_v35 }
  0xc5   :  { %575 = vadd.xlane.f32.xlu0 %v2415_v53  ;;  %v968_v53 = vpop.trf.xlu1 }
  0xc8   :  { %577 = vadd.xlane.f32.xlu1 %v2434_v12 }
  0xc9   :  { %579 = vadd.xlane.f32.xlu0 %v2453_v46 }
  0xcc   :  { %581 = vadd.xlane.f32.xlu1 %v2463_v60 }
  0xd2   :  { %v593_v35 = vpop.permute.xlu0 %592  ;;  %v597_v23 = vpop.permute.xlu1 %596 }
  0xdd   :  { %v1841_v15 = vpop.f32.mrb[0].mxu0 }
  0xde   :  { %v259_v13 = vpop.f32.mrb[1].mxu0 }
  0xdf   :  { %v1842_v19 = vpop.f32.mrb[2].mxu0 }
  0xe0   :  { %v387_v20 = vpack.c.bf16 %v1842_v19, %v1841_v15  ;;  %v262_v21 = vpop.f32.mrb[3].mxu0 }
  0xe1   :  { %v386_v26 = vpack.c.bf16 %v262_v21, %v259_v13  ;;  %v600_v21 = vpop.permute.xlu1 %599 }
  0xe3   :  { %1872 = vmatpush3.bf16.msra.mxu1 %v386_v26 }
  0xe4   :  { %1873 = vmatprep.subr.bf16.mxu1 %v2616_v27 }
  0xe5   :  { %v1845_v30 = vpop.f32.mrb[4].mxu0 }
  0xe6   :  { %v275_v7 = vpop.f32.mrb[5].mxu0 }
  0xe7   :  { %v1846_v40 = vpop.f32.mrb[6].mxu0  ;;  %1874 = vmatpush3.bf16.msra.mxu1 %v387_v20 }
  0xe8   :  { %v389_v51 = vpack.c.bf16 %v1846_v40, %v1845_v30  ;;  %v278_v16 = vpop.f32.mrb[7].mxu0  ;;  %1875 = vmatprep.subr.bf16.mxu1 %v2616_v27 }
  0xe9   :  { %v388_v29 = vpack.c.bf16 %v278_v16, %v275_v7  ;;  %v607_v16 = vpop.permute.xlu0 %606 }
  0xeb   :  { %1876 = vmatpush3.bf16.msra.mxu1 %v388_v29 }
  0xec   :  { %1877 = vmatprep.subr.bf16.mxu1 %v2616_v27 }
  0xed   :  { %v1849_v61 = vpop.f32.mrb[8].mxu0 }
  0xee   :  { %v291_v39 = vpop.f32.mrb[9].mxu0 }
  0xef   :  { %1878 = vmatpush3.bf16.msra.mxu1 %v389_v51  ;;  %v1850_v31 = vpop.f32.mrb[10].mxu0 }
  0xf0   :  { %v391_v33 = vpack.c.bf16 %v1850_v31, %v1849_v61  ;;  %v294_v36 = vpop.f32.mrb[11].mxu0  ;;  %1883 = vmatprep.subr.bf16.mxu1 %v2616_v27 }
  0xf1   :  { %v390_v37 = vpack.c.bf16 %v294_v36, %v291_v39  ;;  %v2619_v36 = vld [vmem:[#allocation7_spill] sm:$0xff] }
  0xf2   :  { %1880 = vmatmul.mubr.msk.bf16.vlgmr.msra.gmra.mrb[0].mxu1 %vm723_vm3, %v715_v18 }
  0xf3   :  { %1884 = vmatpush3.bf16.msra.mxu1 %v390_v37  ;;  %1891 = vmatprep.mubr.msk.bf16.mxu1 %vm2112_vm2, %v2616_v27 }
  0xf4   :  { %1885 = vmatprep.subr.bf16.mxu1 %v2616_v27 }
  0xf5   :  { %v1853_v43 = vpop.f32.mrb[12].mxu0 }
  0xf6   :  { %v307_v62 = vpop.f32.mrb[13].mxu0 }
  0xf7   :  { %v1854_v22 = vpop.f32.mrb[14].mxu0  ;;  %1886 = vmatpush3.bf16.msra.mxu1 %v391_v33 }
  0xf8   :  { %v393_v54 = vpack.c.bf16 %v1854_v22, %v1853_v43  ;;  %v310_v38 = vpop.f32.mrb[15].mxu0  ;;  %1887 = vmatprep.subr.bf16.mxu1 %v2616_v27  ;;  %v2621_v43 = vld [vmem:[#allocation8_spill] sm:$0xff]  ;;  %v614_v22 = vpop.permute.xlu0 %613 }
  0xf9   :  { %v392_v42 = vpack.c.bf16 %v310_v38, %v307_v62  ;;  %v2622_v62 = vld [vmem:[#allocation10_spill] sm:$0xff] }
  0xfb   :  { %1888 = vmatpush3.bf16.msra.mxu1 %v392_v42 }
  0xfc   :  { %1889 = vmatprep.subr.bf16.mxu1 %v2616_v27 }
  0xfd   :  { %v1857_v28 = vpop.f32.mrb[16].mxu0 }
  0xfe   :  { %v323_v0 = vpop.f32.mrb[17].mxu0 }
  0xff   :  { %v1858_v44 = vpop.f32.mrb[18].mxu0  ;;  %1890 = vmatpush3.bf16.msra.mxu1 %v393_v54 }
 0x100   :  { %v395_v52 = vpack.c.bf16 %v1858_v44, %v1857_v28  ;;  %v326_v47 = vpop.f32.mrb[19].mxu0  ;;  %1895 = vmatprep.subr.bf16.mxu1 %v2616_v27 }
 0x101   :  { %v394_v2 = vpack.c.bf16 %v326_v47, %v323_v0 }
 0x102   :  { %1892 = vmatmul.mubr.msk.bf16.vlgmr.msra.gmra.mrb[4].mxu1 %vm723_vm3, %v800_v49 }
 0x103   :  { %1896 = vmatpush3.bf16.msra.mxu1 %v394_v2  ;;  %1903 = vmatprep.mubr.msk.bf16.mxu1 %vm2112_vm2, %v2616_v27  ;;  %v2624_v2 = vld [vmem:[#allocation11_spill] sm:$0xff] }
 0x104   :  { %1897 = vmatprep.subr.bf16.mxu1 %v2616_v27 }
 0x105   :  { %v1861_v55 = vpop.f32.mrb[20].mxu0 }
 0x106   :  { %v339_v45 = vpop.f32.mrb[21].mxu0 }
 0x107   :  { %v1862_v24 = vpop.f32.mrb[22].mxu0  ;;  %1898 = vmatpush3.bf16.msra.mxu1 %v395_v52  ;;  %v2623_v52 = vld [vmem:[#allocation12_spill] sm:$0xff] }
 0x108   :  { %v397_v6 = vpack.c.bf16 %v1862_v24, %v1861_v55  ;;  %v342_v48 = vpop.f32.mrb[23].mxu0  ;;  %1899 = vmatprep.subr.bf16.mxu1 %v2616_v27  ;;  %v2625_v55 = vld [vmem:[#allocation13_spill] sm:$0xff] }
 0x109   :  { %v396_v57 = vpack.c.bf16 %v342_v48, %v339_v45  ;;  %v2626_v45 = vld [vmem:[#allocation14_spill] sm:$0xff] }
 0x10b   :  { %1900 = vmatpush3.bf16.msra.mxu1 %v396_v57 }
 0x10c   :  { %1901 = vmatprep.subr.bf16.mxu1 %v2616_v27 }
 0x10d   :  { %v1865_v50 = vpop.f32.mrb[24].mxu0 }
 0x10e   :  { %v355_v32 = vpop.f32.mrb[25].mxu0 }
 0x10f   :  { %v1866_v63 = vpop.f32.mrb[26].mxu0  ;;  %1902 = vmatpush3.bf16.msra.mxu1 %v397_v6 }
 0x110   :  { %v399_v34 = vpack.c.bf16 %v1866_v63, %v1865_v50  ;;  %v358_v3 = vpop.f32.mrb[27].mxu0  ;;  %1907 = vmatprep.subr.bf16.mxu1 %v2616_v27 }
 0x111   :  { %v398_v41 = vpack.c.bf16 %v358_v3, %v355_v32 }
 0x112   :  { %1904 = vmatmul.mubr.msk.bf16.vlgmr.msra.gmra.mrb[8].mxu1 %vm723_vm3, %v884_v1 }
 0x113   :  { %1908 = vmatpush3.bf16.msra.mxu1 %v398_v41  ;;  %1915 = vmatprep.mubr.msk.bf16.mxu1 %vm2112_vm2, %v2616_v27 }
 0x114   :  { %1909 = vmatprep.subr.bf16.mxu1 %v2616_v27 }
 0x115   :  { %v1869_v58 = vpop.f32.mrb[28].mxu0 }
 0x116   :  { %v371_v5 = vpop.f32.mrb[29].mxu0  ;;  %v520_v24 = vpop.xlane.xlu0 %519 }
 0x117   :  { %v1870_v56 = vpop.f32.mrb[30].mxu0  ;;  %1910 = vmatpush3.bf16.msra.mxu1 %v399_v34 }
 0x118   :  { %v401_v10 = vpack.c.bf16 %v1870_v56, %v1869_v58  ;;  %v374_v4 = vpop.f32.mrb[31].mxu0  ;;  %1911 = vmatprep.subr.bf16.mxu1 %v2616_v27 }
 0x119   :  { %v400_v59 = vpack.c.bf16 %v374_v4, %v371_v5 }
 0x11a   :  { %v524_v6 = vpop.xlane.xlu0 %523 }
 0x11b   :  { %1912 = vmatpush3.bf16.msra.mxu1 %v400_v59  ;;  %v621_v56 = vmax.f32 %v524_v6, 1e-12 }
 0x11c   :  { %1913 = vmatprep.subr.bf16.mxu1 %v2616_v27 }
 0x11d   :  { %2023 = vrcp.f32 %v621_v56 }
 0x11e   :  { %v526_v48 = vpop.xlane.xlu0 %525 }
 0x11f   :  { %1914 = vmatpush3.bf16.msra.mxu1 %v401_v10  ;;  %v622_v4 = vmax.f32 %v526_v48, 1e-12 }
 0x121   :  { %2025 = vrcp.f32 %v622_v4 }
 0x122   :  { %1916 = vmatmul.mubr.msk.bf16.vlgmr.msra.gmra.mrb[12].mxu1 %vm723_vm3, %v968_v53  ;;  %v528_v50 = vpop.xlane.xlu0 %527  ;;  %v619_v53 = vmax.f32 %v520_v24, 1e-12 }
 0x123   :  { %1931 = vmatprep.mubr.msk.bf16.mxu1 %vm434_vm1, %v2176_v9  ;;  %v604_v9 = vpop.permute.xlu1 %603 }
 0x126   :  { %v532_v63 = vpop.xlane.xlu0 %531 }
 0x127   :  { %v611_v61 = vpop.permute.xlu1 %610 }
 0x12a   :  { %v536_v34 = vpop.xlane.xlu0 %535 }
 0x12b   :  { %v618_v38 = vpop.permute.xlu1 %617 }
 0x12e   :  { %v540_v41 = vpop.xlane.xlu0 %539 }
 0x12f   :  { %v522_v57 = vpop.xlane.xlu1 %521 }
 0x130   :  { %v620_v59 = vmax.f32 %v522_v57, 1e-12 }
 0x132   :  { %v2554_v5 = vpop.xlane.xlu0 %543  ;;  %2027 = vrcp.f32 %v620_v59 }
 0x133   :  { %v530_v32 = vpop.xlane.xlu1 %529  ;;  %2029 = vrcp.f32 %v619_v53  ;;  %v631_v24 = vmax.f32 %v2554_v5, 1e-12 }
 0x137   :  { %v534_v1 = vpop.xlane.xlu1 %533 }
 0x13b   :  { %v538_v3 = vpop.xlane.xlu1 %537 }
 0x13f   :  { %v542_v58 = vpop.xlane.xlu1 %541 }
 0x143   :  { %v2556_v10 = vpop.xlane.xlu1 %545 }
 0x1c5   :  { %v761_v25 = vpop.f32.mrb[0].mxu1 }
 0x1c6   :  { %v1020_v15 = vmul.f32 %v761_v25, %v593_v35  ;;  %v1881_v46 = vpop.f32.mrb[1].mxu1  ;;  %v548_v35 = vpop.xlane.xlu0 %547 }
 0x1c7   :  { %v764_v13 = vpop.f32.mrb[2].mxu1  ;;  %v550_v25 = vpop.xlane.xlu1 %549  ;;  %v624_v46 = vmax.f32 %v530_v32, 1e-12 }
 0x1c8   :  { %v1021_v19 = vmul.f32 %v764_v13, %v597_v23  ;;  %v1882_v12 = vpop.f32.mrb[3].mxu1  ;;  %v625_v23 = vmax.f32 %v532_v63, 1e-12 }
 0x1ca   :  { %v1028_v20 = vpack.c.bf16 %v1021_v19, %v1020_v15  ;;  %v626_v15 = vmax.f32 %v534_v1, 1e-12  ;;  %2031 = vrcp.f32 %v625_v23  ;;  %v2558_v13 = vpop.xlane.xlu0 %551  ;;  %v623_v19 = vmax.f32 %v528_v50, 1e-12 }
 0x1cb   :  { %v2560_v12 = vpop.xlane.xlu1 %553 }
 0x1cc   :  { %1919 = vmatprep.subr.bf16.mxu0 %v1028_v20  ;;  %2033 = vrcp.f32 %v626_v15  ;;  %v636_v53 = vmax.f32 %v2560_v12, 1e-12  ;;  %v635_v15 = vmax.f32 %v2558_v13, 1e-12 }
 0x1cd   :  { %1920 = vmatpush3.bf16.msra.mxu0 %v1028_v20  ;;  %v2024_v20 = vpop.eup %2023  ;;  %2035 = vrcp.f32 %v624_v46 }
 0x1ce   :  { %2037 = vrcp.f32 %v623_v19 }
 0x1d0   :  { %1922 = vmatmul.mubr.msk.bf16.vlgmr.msra.gmra.mrb[32].mxu0 %vm434_vm1, %v2169_v8  ;;  %v2617_v8 = vld [vmem:[#allocation5_spill] sm:$0xff] }
 0x1d1   :  { %1925 = vmatprep.mubr.msk.bf16.mxu0 %vm434_vm1, %v2184_v11  ;;  %v2618_v11 = vld [vmem:[#allocation6_spill] sm:$0xff] }
 0x1d5   :  { %v845_v60 = vpop.f32.mrb[4].mxu1 }
 0x1d6   :  { %v1022_v26 = vmul.f32 %v845_v60, %v600_v21  ;;  %v1893_v27 = vpop.f32.mrb[5].mxu1  ;;  %v2026_v21 = vpop.eup %2025 }
 0x1d7   :  { %v848_v30 = vpop.f32.mrb[6].mxu1 }
 0x1d8   :  { %v1023_v7 = vmul.f32 %v848_v30, %v604_v9  ;;  %v1894_v40 = vpop.f32.mrb[7].mxu1  ;;  %1926 = vmatmul.mubr.msk.bf16.gmra.mrb[36].mxu0 %vm434_vm1, %v2199_v14  ;;  %v629_v9 = vmax.f32 %v540_v41, 1e-12 }
 0x1d9   :  { %1941 = vmatprep.mubr.msk.bf16.mxu0 %vm434_vm1, %v2216_v17  ;;  %v2620_v17 = vld [vmem:[#allocation9_spill] sm:$0xff]  ;;  %v556_v40 = vpop.xlane.xlu0 %555 }
 0x1da   :  { %v1029_v51 = vpack.c.bf16 %v1023_v7, %v1022_v26  ;;  %v2028_v26 = vpop.eup %2027  ;;  %v630_v7 = vmax.f32 %v542_v58, 1e-12  ;;  %2039 = vrcp.f32 %v629_v9  ;;  %v637_v1 = vmax.f32 %v556_v40, 1e-12 }
 0x1dc   :  { %1929 = vmatprep.subr.bf16.mxu1 %v1029_v51  ;;  %2041 = vrcp.f32 %v630_v7 }
 0x1dd   :  { %1930 = vmatpush3.bf16.msra.mxu1 %v1029_v51  ;;  %v2030_v51 = vpop.eup %2029 }
 0x1e0   :  { %1932 = vmatmul.mubr.msk.bf16.vlgmr.msra.gmra.mrb[16].mxu1 %vm434_vm1, %v2617_v8 }
 0x1e1   :  { %1935 = vmatprep.mubr.msk.bf16.mxu1 %vm434_vm1, %v2618_v11 }
 0x1e5   :  { %v929_v29 = vpop.f32.mrb[8].mxu1 }
 0x1e6   :  { %v1905_v39 = vpop.f32.mrb[9].mxu1  ;;  %v1024_v18 = vmul.f32 %v929_v29, %v607_v16  ;;  %v2562_v29 = vpop.xlane.xlu1 %557 }
 0x1e7   :  { %v932_v31 = vpop.f32.mrb[10].mxu1  ;;  %v638_v56 = vmax.f32 %v2562_v29, 1e-12 }
 0x1e8   :  { %v1025_v33 = vmul.f32 %v932_v31, %v611_v61  ;;  %v1906_v14 = vpop.f32.mrb[11].mxu1  ;;  %1936 = vmatmul.mubr.msk.bf16.gmra.mrb[20].mxu1 %vm434_vm1, %v2619_v36 }
 0x1e9   :  { %1951 = vmatprep.mubr.msk.bf16.mxu1 %vm434_vm1, %v2620_v17  ;;  %v2032_v14 = vpop.eup %2031 }
 0x1ea   :  { %v1030_v37 = vpack.c.bf16 %v1025_v33, %v1024_v18  ;;  %v628_v18 = vmax.f32 %v538_v3, 1e-12  ;;  %v627_v33 = vmax.f32 %v536_v34, 1e-12  ;;  %v2034_v17 = vpop.eup %2033 }
 0x1ec   :  { %1939 = vmatprep.subr.bf16.mxu0 %v1030_v37  ;;  %2043 = vrcp.f32 %v628_v18 }
 0x1ed   :  { %1940 = vmatpush3.bf16.msra.mxu0 %v1030_v37  ;;  %2045 = vrcp.f32 %v627_v33 }
 0x1f0   :  { %1942 = vmatmul.mubr.msk.bf16.vlgmr.msra.gmra.mrb[40].mxu0 %vm434_vm1, %v2621_v43  ;;  %v633_v43 = vmax.f32 %v548_v35, 1e-12 }
 0x1f1   :  { %1945 = vmatprep.mubr.msk.bf16.mxu0 %vm434_vm1, %v2622_v62  ;;  %v2564_v62 = vpop.xlane.xlu0 %559 }
 0x1f2   :  { %2047 = vrcp.f32 %v633_v43  ;;  %v639_v18 = vmax.f32 %v2564_v62, 1e-12 }
 0x1f5   :  { %v1013_v54 = vpop.f32.mrb[12].mxu1  ;;  %v564_v57 = vpop.xlane.xlu0 %563 }
 0x1f6   :  { %v1917_v42 = vpop.f32.mrb[13].mxu1  ;;  %v1026_v0 = vmul.f32 %v1013_v54, %v614_v22  ;;  %v641_v9 = vmax.f32 %v564_v57, 1e-12 }
 0x1f7   :  { %v1016_v28 = vpop.f32.mrb[14].mxu1  ;;  %v2036_v42 = vpop.eup %2035 }
 0x1f8   :  { %v1027_v44 = vmul.f32 %v1016_v28, %v618_v38  ;;  %v1918_v49 = vpop.f32.mrb[15].mxu1  ;;  %1946 = vmatmul.mubr.msk.bf16.gmra.mrb[44].mxu0 %vm434_vm1, %v2623_v52  ;;  %v2566_v38 = vpop.xlane.xlu1 %561 }
 0x1f9   :  { %v640_v29 = vmax.f32 %v2566_v38, 1e-12 }
 0x1fa   :  { %v1031_v47 = vpack.c.bf16 %v1027_v44, %v1026_v0  ;;  %v634_v0 = vmax.f32 %v550_v25, 1e-12  ;;  %v2038_v44 = vpop.eup %2037  ;;  %v2572_v25 = vpop.xlane.xlu0 %567 }
 0x1fb   :  { %v2040_v6 = vpop.eup %2039 }
 0x1fc   :  { %1949 = vmatprep.subr.bf16.mxu1 %v1031_v47  ;;  %2049 = vrcp.f32 %v634_v0  ;;  %v566_v50 = vpop.xlane.xlu1 %565  ;;  %v2042_v32 = vpop.eup %2041 }
 0x1fd   :  { %1950 = vmatpush3.bf16.msra.mxu1 %v1031_v47  ;;  %v2044_v41 = vpop.eup %2043  ;;  %v642_v7 = vmax.f32 %v566_v50, 1e-12 }
 0x1fe   :  { %v572_v40 = vpop.xlane.xlu0 %571 }
 0x200   :  { %1952 = vmatmul.mubr.msk.bf16.vlgmr.msra.gmra.mrb[24].mxu1 %vm434_vm1, %v2624_v2  ;;  %v632_v2 = vmax.f32 %v2556_v10, 1e-12  ;;  %v2046_v10 = vpop.eup %2045  ;;  %v570_v46 = vpop.xlane.xlu1 %569 }
 0x201   :  { %1955 = vmatprep.mubr.msk.bf16.mxu1 %vm434_vm1, %v2625_v55  ;;  %v2048_v19 = vpop.eup %2047 }
 0x202   :  { %2051 = vrcp.f32 %v632_v2 }
 0x203   :  { %2053 = vrcp.f32 %v631_v24 }
 0x204   :  { %2055 = vrcp.f32 %v637_v1 }
 0x205   :  { %2057 = vrcp.f32 %v638_v56 }
 0x206   :  { %2059 = vrcp.f32 %v636_v53 }
 0x207   :  { %2061 = vrcp.f32 %v635_v15 }
 0x208   :  { %1956 = vmatmul.mubr.msk.bf16.gmra.mrb[28].mxu1 %vm434_vm1, %v2626_v45  ;;  %2063 = vrcp.f32 %v641_v9 }
 0x209   :  { %2065 = vrcp.f32 %v642_v7 }
 0x20a   :  { %2067 = vrcp.f32 %v640_v29 }
 0x20b   :  { %2069 = vrcp.f32 %v639_v18 }
 0x2a3   :  { %v1923_v60 = vpop.f32.mrb[32].mxu0 }
 0x2a4   :  { %v1078_v27 = vpop.f32.mrb[33].mxu0  ;;  %v1342_v8 = vmul.f32 %v2024_v20, %v1923_v60 }
 0x2a5   :  { %v1924_v30 = vpop.f32.mrb[34].mxu0  ;;  %v1340_v61 = vmul.f32 %v2030_v51, %v1078_v27 }
 0x2a6   :  { %v1343_v11 = vmul.f32 %v2026_v21, %v1924_v30  ;;  %v1081_v16 = vpop.f32.mrb[35].mxu0  ;;  %v2050_v21 = vpop.eup %2049 }
 0x2a7   :  { %v1341_v39 = vmul.f32 %v2028_v26, %v1081_v16  ;;  %v2052_v27 = vpop.eup %2051 }
 0x2a8   :  { %v1690_v31 = vpack.c.bf16 %v1343_v11, %v1342_v8  ;;  %v2054_v51 = vpop.eup %2053  ;;  %v574_v11 = vpop.xlane.xlu1 %573 }
 0x2a9   :  { %v1685_v36 = vpack.c.bf16 %v1341_v39, %v1340_v61 }
 0x2aa   :  { %1762 = vst [vmem:[#allocation2 + $0x8] sm:$0xff] %v1690_v31   ;;  %v2056_v31 = vpop.eup %2055 }
 0x2ab   :  { %1686 = vst [vmem:[#allocation2] sm:$0xff] %v1685_v36   ;;  %v1927_v37 = vpop.f32.mrb[36].mxu0 }
 0x2ac   :  { %v1346_v22 = vmul.f32 %v2032_v14, %v1927_v37  ;;  %v1094_v54 = vpop.f32.mrb[37].mxu0  ;;  %v2058_v14 = vpop.eup %2057 }
 0x2ad   :  { %v1928_v28 = vpop.f32.mrb[38].mxu0  ;;  %v1344_v47 = vmul.f32 %v2038_v44, %v1094_v54  ;;  %v578_v54 = vpop.xlane.xlu1 %577 }
 0x2ae   :  { %v1347_v49 = vmul.f32 %v2034_v17, %v1928_v28  ;;  %v1097_v52 = vpop.f32.mrb[39].mxu0  ;;  %v576_v17 = vpop.xlane.xlu0 %575  ;;  %v646_v28 = vmax.f32 %v574_v11, 1e-12 }
 0x2af   :  { %v1345_v55 = vmul.f32 %v2036_v42, %v1097_v52  ;;  %v2060_v38 = vpop.eup %2059  ;;  %v644_v52 = vmax.f32 %v570_v46, 1e-12 }
 0x2b0   :  { %v1700_v45 = vpack.c.bf16 %v1347_v49, %v1346_v22  ;;  %v645_v22 = vmax.f32 %v572_v40, 1e-12  ;;  %v2062_v0 = vpop.eup %2061 }
 0x2b1   :  { %v1695_v48 = vpack.c.bf16 %v1345_v55, %v1344_v47  ;;  %v643_v55 = vmax.f32 %v2572_v25, 1e-12 }
 0x2b2   :  { %1764 = vst [vmem:[#allocation2 + $0x18] sm:$0xff] %v1700_v45   ;;  %2071 = vrcp.f32 %v645_v22  ;;  %v2064_v45 = vpop.eup %2063 }
 0x2b3   :  { %1763 = vst [vmem:[#allocation2 + $0x10] sm:$0xff] %v1695_v48   ;;  %v1933_v63 = vpop.f32.mrb[16].mxu1  ;;  %2073 = vrcp.f32 %v646_v28  ;;  %v582_v48 = vpop.xlane.xlu1 %581 }
 0x2b4   :  { %v1350_v34 = vmul.f32 %v2040_v6, %v1933_v63  ;;  %v1155_v3 = vpop.f32.mrb[17].mxu1  ;;  %v580_v6 = vpop.xlane.xlu0 %579  ;;  %2075 = vrcp.f32 %v644_v52 }
 0x2b5   :  { %v1934_v58 = vpop.f32.mrb[18].mxu1  ;;  %v1348_v59 = vmul.f32 %v2046_v10, %v1155_v3  ;;  %v2066_v57 = vpop.eup %2065  ;;  %2077 = vrcp.f32 %v643_v55  ;;  %v649_v1 = vmax.f32 %v580_v6, 1e-12 }
 0x2b6   :  { %v1351_v5 = vmul.f32 %v2042_v32, %v1934_v58  ;;  %v1158_v4 = vpop.f32.mrb[19].mxu1 }
 0x2b7   :  { %v1349_v35 = vmul.f32 %v2044_v41, %v1158_v4  ;;  %v650_v41 = vmax.f32 %v582_v48, 1e-12  ;;  %v648_v4 = vmax.f32 %v578_v54, 1e-12  ;;  %2079 = vrcp.f32 %v649_v1 }
 0x2b8   :  { %v1710_v23 = vpack.c.bf16 %v1351_v5, %v1350_v34  ;;  %v2068_v34 = vpop.eup %2067 }
 0x2b9   :  { %v1705_v20 = vpack.c.bf16 %v1349_v35, %v1348_v59  ;;  %v2070_v58 = vpop.eup %2069  ;;  %v647_v35 = vmax.f32 %v576_v17, 1e-12  ;;  %2081 = vrcp.f32 %v650_v41 }
 0x2ba   :  { %1766 = vst [vmem:[#allocation2 + $0x28] sm:$0xff] %v1710_v23   ;;  %2083 = vrcp.f32 %v648_v4 }
 0x2bb   :  { %1765 = vst [vmem:[#allocation2 + $0x20] sm:$0xff] %v1705_v20   ;;  %v1937_v60 = vpop.f32.mrb[20].mxu1  ;;  %2085 = vrcp.f32 %v647_v35 }
 0x2bc   :  { %v1354_v26 = vmul.f32 %v2048_v19, %v1937_v60  ;;  %v1171_v12 = vpop.f32.mrb[21].mxu1  ;;  %v2072_v23 = vpop.eup %2071 }
 0x2bd   :  { %v1938_v30 = vpop.f32.mrb[22].mxu1  ;;  %v1352_v16 = vmul.f32 %v2054_v51, %v1171_v12  ;;  %v2074_v15 = vpop.eup %2073 }
 0x2be   :  { %v1355_v8 = vmul.f32 %v2050_v21, %v1938_v30  ;;  %v1174_v13 = vpop.f32.mrb[23].mxu1  ;;  %v2076_v20 = vpop.eup %2075 }
 0x2bf   :  { %v1353_v61 = vmul.f32 %v2052_v27, %v1174_v13  ;;  %v2078_v60 = vpop.eup %2077 }
 0x2c0   :  { %v1720_v39 = vpack.c.bf16 %v1355_v8, %v1354_v26 }
 0x2c1   :  { %v1715_v33 = vpack.c.bf16 %v1353_v61, %v1352_v16  ;;  %v2080_v51 = vpop.eup %2079 }
 0x2c2   :  { %1768 = vst [vmem:[#allocation2 + $0x38] sm:$0xff] %v1720_v39  }
 0x2c3   :  { %1767 = vst [vmem:[#allocation2 + $0x30] sm:$0xff] %v1715_v33   ;;  %v1943_v36 = vpop.f32.mrb[40].mxu0  ;;  %v2082_v8 = vpop.eup %2081 }
 0x2c4   :  { %v1358_v37 = vmul.f32 %v2056_v31, %v1943_v36  ;;  %v1232_v43 = vpop.f32.mrb[41].mxu0  ;;  %v2084_v16 = vpop.eup %2083 }
 0x2c5   :  { %v1944_v42 = vpop.f32.mrb[42].mxu0  ;;  %v1356_v49 = vmul.f32 %v2062_v0, %v1232_v43  ;;  %v2086_v61 = vpop.eup %2085 }
 0x2c6   :  { %v1359_v44 = vmul.f32 %v2058_v14, %v1944_v42  ;;  %v1235_v62 = vpop.f32.mrb[43].mxu0 }
 0x2c7   :  { %v1357_v47 = vmul.f32 %v2060_v38, %v1235_v62 }
 0x2c8   :  { %v1730_v2 = vpack.c.bf16 %v1359_v44, %v1358_v37 }
 0x2c9   :  { %v1725_v24 = vpack.c.bf16 %v1357_v47, %v1356_v49 }
 0x2ca   :  { %1770 = vst [vmem:[#allocation2 + $0x48] sm:$0xff] %v1730_v2  }
 0x2cb   :  { %1769 = vst [vmem:[#allocation2 + $0x40] sm:$0xff] %v1725_v24   ;;  %v1947_v50 = vpop.f32.mrb[44].mxu0 }
 0x2cc   :  { %v1362_v32 = vmul.f32 %v2064_v45, %v1947_v50  ;;  %v1248_v63 = vpop.f32.mrb[45].mxu0 }
 0x2cd   :  { %v1948_v3 = vpop.f32.mrb[46].mxu0  ;;  %v1360_v5 = vmul.f32 %v2070_v58, %v1248_v63 }
 0x2ce   :  { %v1363_v56 = vmul.f32 %v2066_v57, %v1948_v3  ;;  %v1251_v10 = vpop.f32.mrb[47].mxu0 }
 0x2cf   :  { %v1361_v59 = vmul.f32 %v2068_v34, %v1251_v10 }
 0x2d0   :  { %v1740_v53 = vpack.c.bf16 %v1363_v56, %v1362_v32 }
 0x2d1   :  { %v1735_v25 = vpack.c.bf16 %v1361_v59, %v1360_v5 }
 0x2d2   :  { %1772 = vst [vmem:[#allocation2 + $0x58] sm:$0xff] %v1740_v53  }
 0x2d3   :  { %1771 = vst [vmem:[#allocation2 + $0x50] sm:$0xff] %v1735_v25   ;;  %v1953_v46 = vpop.f32.mrb[24].mxu1 }
 0x2d4   :  { %v1309_v19 = vpop.f32.mrb[25].mxu1  ;;  %v1366_v9 = vmul.f32 %v2072_v23, %v1953_v46 }
 0x2d5   :  { %v1954_v21 = vpop.f32.mrb[26].mxu1  ;;  %v1364_v27 = vmul.f32 %v2078_v60, %v1309_v19 }
 0x2d6   :  { %v1367_v26 = vmul.f32 %v2074_v15, %v1954_v21  ;;  %v1312_v12 = vpop.f32.mrb[27].mxu1 }
 0x2d7   :  { %v1365_v30 = vmul.f32 %v2076_v20, %v1312_v12 }
 0x2d8   :  { %v1750_v7 = vpack.c.bf16 %v1367_v26, %v1366_v9 }
 0x2d9   :  { %v1745_v40 = vpack.c.bf16 %v1365_v30, %v1364_v27 }
 0x2da   :  { %1774 = vst [vmem:[#allocation2 + $0x68] sm:$0xff] %v1750_v7  }
 0x2db   :  { %1773 = vst [vmem:[#allocation2 + $0x60] sm:$0xff] %v1745_v40   ;;  %v1957_v13 = vpop.f32.mrb[28].mxu1 }
 0x2dc   :  { %v1325_v11 = vpop.f32.mrb[29].mxu1  ;;  %v1370_v39 = vmul.f32 %v2080_v51, %v1957_v13 }
 0x2dd   :  { %v1958_v29 = vpop.f32.mrb[30].mxu1  ;;  %v1368_v33 = vmul.f32 %v2086_v61, %v1325_v11 }
 0x2de   :  { %v1371_v18 = vmul.f32 %v2082_v8, %v1958_v29  ;;  %v1328_v31 = vpop.f32.mrb[31].mxu1 }
 0x2df   :  { %v1369_v14 = vmul.f32 %v2084_v16, %v1328_v31 }
 0x2e0   :  { %v1760_v36 = vpack.c.bf16 %v1371_v18, %v1370_v39 }
 0x2e1   :  { %v1755_v17 = vpack.c.bf16 %v1369_v14, %v1368_v33 }
 0x2e2   :  { %1776 = vst [vmem:[#allocation2 + $0x78] sm:$0xff] %v1760_v36  }
 0x2e3   :  { %1775 = vst [vmem:[#allocation2 + $0x70] sm:$0xff] %v1755_v17  }
 0x2e4   :  { %2098 = shalt.err (!%p2095_p4)
}
 0x2e5   :  { %s2099_s26 = scalar_lea.hbm %s2593_s3, 2048 }
 0x2e6   :  { %p2100_p5 = scmp.ne.s32.totalorder %s2593_s3, %s2099_s26  ;;  %p2103_p6 = scmp.lt.u32.totalorder %s2099_s26, %s2593_s3 }
 0x2e8   :  { %p2105_p7 = pnand %p2103_p6, %p2100_p5 }
 0x2ea   :  { %2108 = shalt.err (!%p2105_p7)
}
 0x2eb   :  { %s2114_s4 = smov 64   ;;  %s2115_s5 = smov 4  }
 0x2ec   :  { %1543 = dma.vmem_to_hbm [thread:$0]  %s1538_s22, 2048, %s2593_s3, [#allocation3], %s2114_s4, %s2114_s4, %s2115_s5  }
 0x2ed   :  { %2109 = dma.done.wait [#allocation3], 2048  }
 0x2ee   :  { %2110 = vsyncadd [#allocation3], 4294965248 }
 0x2ef   :  { %1547 = vsyncpa [#allocation3], 1 }

</bundles_post_ra>
